<compile_context>
chip_gen: v5e
topology: v5e:2x2
jax: 0.10.0
libtpu: 0.0.40
codegen_flags: <defaults>
</compile_context>

<pallas_src>
import functools

import jax
import jax.numpy as jnp
from jax.experimental import pallas as pl
from jax.experimental.pallas import tpu as pltpu

TILE_B_TARGET = 1024      # batch rows per grid step; sweep 1024-2048 if desired
MIN_PALLAS_BATCH = 128    # below this, kernel-launch overhead > real work


def relational_nn_kernel(x_ref, w1_ref, w2_ref, y_ref, *, compute_dtype):
    """One batch tile of y = relu(x @ w1) @ w2.

    x_ref : (tb, x_dim)      VMEM, streamed per grid step (unpadded lanes)
    w1_ref: (x_dim, h_dim)   VMEM, resident across the whole grid
    w2_ref: (h_dim, y_dim)   VMEM, resident across the whole grid
    y_ref : (tb, y_dim)      VMEM (unpadded lanes)
    """
    # In-kernel cast (VPU) — free filler under DMA slack; keeps x f32 in HBM.
    x = x_ref[...].astype(compute_dtype)
    h = jnp.dot(x, w1_ref[...], preferred_element_type=jnp.float32)
    h = jnp.maximum(h, 0.0)                       # ReLU on the f32 accumulator
    y = jnp.dot(h.astype(compute_dtype), w2_ref[...],
                preferred_element_type=jnp.float32)
    y_ref[...] = y.astype(y_ref.dtype)


def prepare_params(fc1_w, fc2_w, compute_dtype=jnp.bfloat16):
    """Hoisted out of the hot path: PyTorch (out, in) -> (in, out) + cast, once."""
    w1_t = jnp.asarray(fc1_w).T.astype(compute_dtype)   # (x_dim, h_dim)
    w2_t = jnp.asarray(fc2_w).T.astype(compute_dtype)   # (h_dim, y_dim)
    return w1_t, w2_t


def relational_nn_forward(x, w1_t, w2_t, *, tile_b=TILE_B_TARGET,
                          min_pallas_batch=MIN_PALLAS_BATCH):
    """RelationalNN.forward (linear_flag=False): y = fc2(relu(fc1(x))), no biases.

    x    : (B, x_dim)           (stays in its own dtype in HBM; cast in-kernel)
    w1_t : (x_dim, h_dim)       pre-transposed, compute dtype (see prepare_params)
    w2_t : (h_dim, y_dim)
    Returns (B, y_dim) in x.dtype.
    """
    out_dtype = x.dtype
    compute_dtype = w1_t.dtype
    B, x_dim = x.shape
    h_dim = w1_t.shape[1]
    y_dim = w2_t.shape[1]

    if B < min_pallas_batch:
        # Tiny batches: fused XLA matmul+relu beats fixed pallas_call/DMA cost.
        h = jnp.maximum(
            jnp.dot(x.astype(compute_dtype), w1_t,
                    preferred_element_type=jnp.float32), 0.0)
        y = jnp.dot(h.astype(compute_dtype), w2_t,
                    preferred_element_type=jnp.float32)
        return y.astype(out_dtype)

    # Batch tile: whole batch when it fits in one tile (block dim == array dim is
    # always legal), otherwise a sublane-aligned tile; non-divisible last tiles
    # are clipped by Pallas (no cross-row reduction, so padded reads are benign).
    if B <= tile_b:
        tb = B
        grid = (1,)
    else:
        assert tile_b % 8 == 0, "tile_b must be a multiple of the f32 sublane (8)"
        tb = tile_b
        grid = (pl.cdiv(B, tb),)          # >= 2 steps => both v7x TCs busy

    kernel = functools.partial(relational_nn_kernel, compute_dtype=compute_dtype)

    return pl.pallas_call(
        kernel,
        out_shape=jax.ShapeDtypeStruct((B, y_dim), out_dtype),
        grid=grid,
        in_specs=[
            pl.BlockSpec((tb, x_dim), lambda i: (i, 0)),      # streamed, unpadded
            pl.BlockSpec((x_dim, h_dim), lambda i: (0, 0)),   # resident, DMA'd once
            pl.BlockSpec((h_dim, y_dim), lambda i: (0, 0)),   # resident, DMA'd once
        ],
        out_specs=pl.BlockSpec((tb, y_dim), lambda i: (i, 0)),  # unpadded writeback
        compiler_params=pltpu.CompilerParams(
            dimension_semantics=("parallel",),   # megacore/dual-TC batch sharding
        ),
    )(x, w1_t, w2_t)


def init_params(key, x_dim, h_dim, y_dim, dtype=jnp.float32):
    """nn.Linear default init: U(-1/sqrt(fan_in), +1/sqrt(fan_in)), weights (out, in)."""
    k1, k2 = jax.random.split(key)
    b1 = 1.0 / (x_dim ** 0.5)
    b2 = 1.0 / (h_dim ** 0.5)
    fc1_w = jax.random.uniform(k1, (h_dim, x_dim), dtype, minval=-b1, maxval=b1)
    fc2_w = jax.random.uniform(k2, (y_dim, h_dim), dtype, minval=-b2, maxval=b2)
    return fc1_w, fc2_w


if __name__ == "__main__":
    # Small shapes consistent with the module's forward: x is (batch, x_dim).
    x_dim, h_dim, y_dim = 16, 32, 8

    key = jax.random.PRNGKey(0)
    kx, kp, kb = jax.random.split(key, 3)
    fc1_w, fc2_w = init_params(kp, x_dim, h_dim, y_dim)

    # Hoisted (once-per-load) weight prep in both exact-f32 and bf16 flavors.
    w1_f32, w2_f32 = prepare_params(fc1_w, fc2_w, compute_dtype=jnp.float32)
    w1_bf16, w2_bf16 = prepare_params(fc1_w, fc2_w, compute_dtype=jnp.bfloat16)

    def reference(xv):
        return jnp.maximum(xv @ fc1_w.T, 0.0) @ fc2_w.T

    # --- batch=8: small-batch bypass (plain fused XLA path) ---
    x_small = jax.random.normal(kx, (8, x_dim), dtype=jnp.float32)
    y_ref_small = reference(x_small)
    y_bypass = jax.block_until_ready(
        relational_nn_forward(x_small, w1_f32, w2_f32))
    assert y_bypass.shape == (8, y_dim)
    assert jnp.allclose(y_bypass, y_ref_small, atol=1e-4, rtol=1e-4)

    # --- batch=8: force the Pallas kernel (min_pallas_batch=0), f32 compute ---
    y_pl_small = jax.block_until_ready(
        relational_nn_forward(x_small, w1_f32, w2_f32, min_pallas_batch=0))
    assert y_pl_small.shape == (8, y_dim)
    assert jnp.allclose(y_pl_small, y_ref_small, atol=1e-4, rtol=1e-4)

    # --- larger batch: non-multiple of the tile, >=2 grid steps (partial last tile) ---
    big_b = 2500
    x_big = jax.random.normal(kb, (big_b, x_dim), dtype=jnp.float32)
    y_ref_big = reference(x_big)

    y_big_f32 = jax.block_until_ready(
        relational_nn_forward(x_big, w1_f32, w2_f32))
    assert y_big_f32.shape == (big_b, y_dim)
    assert jnp.allclose(y_big_f32, y_ref_big, atol=1e-4, rtol=1e-4)

    y_big_bf16 = jax.block_until_ready(
        relational_nn_forward(x_big, w1_bf16, w2_bf16))
    assert y_big_bf16.shape == (big_b, y_dim)
    assert jnp.allclose(y_big_bf16, y_ref_big, atol=5e-2, rtol=5e-2)

    print("KERNEL_OK")
</pallas_src>

<mosaic_0001>
module attributes {stable_mosaic.version = 11 : i64} {
  func.func @relational_nn_kernel(%arg0: i32, %arg1: memref<8x16xf32, #tpu.memory_space<vmem>>, %arg2: memref<16x32xf32, #tpu.memory_space<vmem>>, %arg3: memref<32x8xf32, #tpu.memory_space<vmem>>, %arg4: memref<8x8xf32, #tpu.memory_space<vmem>>) attributes {dimension_semantics = [#tpu.dimension_semantics<parallel>], iteration_bounds = array<i64: 1>, scalar_prefetch = 0 : i64, scratch_operands = 0 : i64, tpu.core_type = #tpu.core_type<tc>, window_params = [{transform_indices = @transform_0, window_bounds = array<i64: 8, 16>}, {pipeline_mode = #tpu.pipeline_mode<synchronous>, transform_indices = @transform_1, window_bounds = array<i64: 16, 32>}, {pipeline_mode = #tpu.pipeline_mode<synchronous>, transform_indices = @transform_2, window_bounds = array<i64: 32, 8>}, {transform_indices = @transform_3, window_bounds = array<i64: 8, 8>}]} {
    %c0 = arith.constant 0 : index
    %c0_0 = arith.constant 0 : index
    %0 = vector.load %arg1[%c0, %c0_0] : memref<8x16xf32, #tpu.memory_space<vmem>>, vector<8x16xf32>
    %c0_1 = arith.constant 0 : index
    %c0_2 = arith.constant 0 : index
    %1 = vector.load %arg2[%c0_1, %c0_2] : memref<16x32xf32, #tpu.memory_space<vmem>>, vector<16x32xf32>
    %cst = arith.constant dense<0.000000e+00> : vector<8x32xf32>
    %2 = tpu.matmul %0, %1, %cst {dimension_numbers = #tpu.dot_dimension_numbers<[1], [0], [0], [1], [0, 0, 1, 1], [], []>} : vector<8x16xf32>, vector<16x32xf32>, vector<8x32xf32> -> vector<8x32xf32>
    %cst_3 = arith.constant 0.000000e+00 : f32
    %3 = vector.broadcast %cst_3 : f32 to vector<8x32xf32>
    %4 = arith.maximumf %2, %3 : vector<8x32xf32>
    %c0_4 = arith.constant 0 : index
    %c0_5 = arith.constant 0 : index
    %5 = vector.load %arg3[%c0_4, %c0_5] : memref<32x8xf32, #tpu.memory_space<vmem>>, vector<32x8xf32>
    %cst_6 = arith.constant dense<0.000000e+00> : vector<8x8xf32>
    %6 = tpu.matmul %4, %5, %cst_6 {dimension_numbers = #tpu.dot_dimension_numbers<[1], [0], [0], [1], [0, 0, 1, 1], [], []>} : vector<8x32xf32>, vector<32x8xf32>, vector<8x8xf32> -> vector<8x8xf32>
    %c0_7 = arith.constant 0 : index
    %c0_8 = arith.constant 0 : index
    %7 = vector.load %arg4[%c0_7, %c0_8] : memref<8x8xf32, #tpu.memory_space<vmem>>, vector<8x8xf32>
    tpu.vector_store %arg4[%c0_7, %c0_8], %6 {strides = array<i32>} : memref<8x8xf32, #tpu.memory_space<vmem>>, vector<8x8xf32>,
    return
  }
  func.func @transform_0(%arg0: i32) -> (i32, i32) {
    %c0_i32 = arith.constant 0 : i32
    %c0_i32_0 = arith.constant 0 : i32
    return %arg0, %c0_i32 : i32, i32
  }
  func.func @transform_1(%arg0: i32) -> (i32, i32) {
    %c0_i32 = arith.constant 0 : i32
    %c0_i32_0 = arith.constant 0 : i32
    %c0_i32_1 = arith.constant 0 : i32
    return %c0_i32, %c0_i32_0 : i32, i32
  }
  func.func @transform_2(%arg0: i32) -> (i32, i32) {
    %c0_i32 = arith.constant 0 : i32
    %c0_i32_0 = arith.constant 0 : i32
    %c0_i32_1 = arith.constant 0 : i32
    return %c0_i32, %c0_i32_0 : i32, i32
  }
  func.func @transform_3(%arg0: i32) -> (i32, i32) {
    %c0_i32 = arith.constant 0 : i32
    %c0_i32_0 = arith.constant 0 : i32
    return %arg0, %c0_i32 : i32, i32
  }
}

</mosaic_0001>

<bundles_post_ra>
// kernel: tpu_custom_call.1
= control target key start
LH: loop header
LB: loop body
LE: loop exit
PB: predicated region body
PF: predicated region fallthrough
CT: control target
= control target key end

     0   :  { %vm18_vm0 = vcmask 130048   ;;  %s163_s0 = inlined_call_operand.vmem [shape: f32[8,16], index: 0, kind: input, shape index: {}]   ;;  %s164_s1 = inlined_call_operand.vmem [shape: f32[16,32], index: 1, kind: input, shape index: {}]   ;;  %s165_s2 = inlined_call_operand.vmem [shape: f32[32,8], index: 2, kind: input, shape index: {}]   ;;  %s166_s3 = inlined_call_operand.hbm [shape: f32[8,8], index: 3, kind: output, shape index: {}]  }
   0x1   :  { %v17_v0 = vld [vmem:[%s164_s1 + $0x8] sm:$0xff]  ;;  %v16_v1 = vld [vmem:[%s164_s1] sm:$0xff]  ;;  %v46_v3 = vld [vmem:[%s165_s2 + $0x18] sm:$0xff] }
   0x2   :  { %v15_v2 = vld [vmem:[%s163_s0] sm:$0xff]  ;;  %36 = vmatpush.msra.mxu0 %v17_v0  ;;  %v45_v4 = vld [vmem:[%s165_s2 + $0x10] sm:$0xff] }
   0x3   :  { %8 = vsyncpa [#allocation3], 0  ;;  %63 = vmatpush.msra.mxu1 %v46_v3  ;;  %v44_v5 = vld [vmem:[%s165_s2 + $0x8] sm:$0xff]  ;;  %v43_v6 = vld [vmem:[%s165_s2] sm:$0xff]  ;;  %vm47_vm1 = vcmask 261120   ;;  %s118_s24 = smov [#allocation2]  }
   0x4   :  { %37 = vmatpush.msra.mxu0 %v16_v1  ;;  %s78_s25 = sshll.u32 %s118_s24, 4  ;;  %s80_s28 = sshll.u32 %s166_s3, 4  ;;  %vm71_vm2 = vcmask 64512   ;;  %s79_s25 = int_to_ptr.vmem [resolvable:$true] %s78_s25  ;;  %s81_s28 = int_to_ptr.hbm [resolvable:$true] %s80_s28 }
   0x5   :  { %89 = vmatmul.msk.f32.vlgmr.msra.gmra.mxu0 %vm18_vm0, %v15_v2  ;;  %64 = vmatpush.msra.mxu1 %v45_v4 }
   0x7   :  { %65 = vmatpush.msra.mxu1 %v44_v5 }
   0x9   :  { %66 = vmatpush.msra.mxu1 %v43_v6 }
  0x82   :  { %v39_v7 = vpop.f32.mrf.mxu0 }
  0x83   :  { %v42_v8 = vmax.f32 %v39_v7, 0.0 }
  0x85   :  { %90 = vmatmul.msk.f32.vlgmr.msra.gmra.mxu1 %vm47_vm1, %v42_v8 }
 0x102   :  { %v68_v9 = vpop.f32.mrf.mxu1 }
 0x103   :  { %72 = vst.msk [vmem:[#allocation2] sm:$0xff] %vm71_vm2, %v68_v9 }
 0x104   :  { %83 = dma.vmem_to_hbm [thread:$0]  %s79_s25, 128, %s81_s28, [#allocation3]  }
 0x105   :  { %116 = dma.done.wait [#allocation3], 128  }
 0x106   :  { %117 = vsyncadd [#allocation3], 4294967168 }
 0x107   :  { %88 = vsyncpa [#allocation3], 1 }

</bundles_post_ra>
